<compile_context>
chip_gen: v7x
topology: tpu7x:2x2x1
jax: 0.10.0
libtpu: 0.0.40
codegen_flags: <defaults>
</compile_context>

<pallas_src>
import math
import functools

import numpy as np
import jax
import jax.numpy as jnp
from jax import lax
from jax.experimental import pallas as pl
from jax.experimental.pallas import tpu as pltpu

_LANE = 128
_NEG_BIG = -1e30   # Python float: jnp scalars would be captured constants.


def _round_up(x, m):
    return ((x + m - 1) // m) * m


def _vmem_capacity_bytes():
    try:
        return int(pltpu.get_tpu_info().vmem_capacity_bytes)
    except Exception:
        return 64 << 20   # conservative (v7x per-TC figure)


def _row_tiling(n):
    """Pad rows to a sublane multiple, pick a generation-aware row tile and
    give the row grid >= 2 steps whenever n allows (v7x 2-TC sharding)."""
    n8 = _round_up(max(int(n), 8), 8)
    max_tile = 128 if _vmem_capacity_bytes() <= (64 << 20) else 256
    tn = min(max_tile, _round_up(-(-n8 // 2), 8))
    n_pad = _round_up(n8, tn)
    return n_pad, tn


def _vmem_limit_bytes(resident, per_buffer, scratch):
    need = resident + 2 * per_buffer + scratch
    cap = _vmem_capacity_bytes()
    return int(min(max(int(need * 1.4) + (2 << 20), 16 << 20), cap - (8 << 20)))


def _resident_spec(shape):
    """Whole-operand-resident block: constant index map, single buffer."""
    try:
        return pl.BlockSpec(shape, lambda i: (0, 0),
                            pipeline_mode=pl.Buffered(1))
    except (TypeError, AttributeError):   # older jax: fall back to default pipelining
        return pl.BlockSpec(shape, lambda i: (0, 0))


# --------------------------------------------------------------------------- kernels

def _clip_kernel(x_ref, w_ref, prob_ref, ent_ref, *, k_valid):
    # logits = 100 * X @ W ; prob = softmax(logits) ; ent = -(p * log p).sum(-1)
    logits = 100.0 * jnp.dot(x_ref[...], w_ref[...],
                             preferred_element_type=jnp.float32)
    col = lax.broadcasted_iota(jnp.int32, logits.shape, 1)
    valid = col < k_valid
    logits = jnp.where(valid, logits, _NEG_BIG)            # mask padded classes
    m = jnp.max(logits, axis=-1, keepdims=True)
    e = jnp.exp(logits - m)
    s = jnp.sum(e, axis=-1, keepdims=True)
    p = e * (1.0 / s)                                       # exact divide
    prob_ref[...] = p.astype(prob_ref.dtype)                # bf16 store
    logp = (logits - m) - jnp.log(s)
    plogp = jnp.where(valid, p * logp, 0.0)
    ent = -jnp.sum(plogp, axis=-1, keepdims=True)           # (tn, 1)
    ent_ref[...] = jnp.broadcast_to(ent, ent_ref.shape)     # lane-dense store


def _final_kernel(x_ref, w_ref, pk_ref, pv_ref, nk_ref, nv_ref, out_ref, *, k_valid):
    # final = softmax(100*X@W + exp(X@Kp')@Vp' + exp(X@Kn')@Vn')
    # alpha / beta / exp(-beta) / sign are folded into Kp',Vp',Kn',Vn' on the
    # host; padded cache rows have zero value rows -> contribute exactly 0.
    x = x_ref[...]
    logits = 100.0 * jnp.dot(x, w_ref[...], preferred_element_type=jnp.float32)

    pos_w = jnp.exp(jnp.dot(x, pk_ref[...],
                            preferred_element_type=jnp.float32)).astype(jnp.bfloat16)
    logits = logits + jnp.dot(pos_w, pv_ref[...], preferred_element_type=jnp.float32)

    neg_w = jnp.exp(jnp.dot(x, nk_ref[...],
                            preferred_element_type=jnp.float32)).astype(jnp.bfloat16)
    logits = logits + jnp.dot(neg_w, nv_ref[...], preferred_element_type=jnp.float32)

    col = lax.broadcasted_iota(jnp.int32, logits.shape, 1)
    logits = jnp.where(col < k_valid, logits, _NEG_BIG)
    m = jnp.max(logits, axis=-1, keepdims=True)
    e = jnp.exp(logits - m)
    out_ref[...] = (e * (1.0 / jnp.sum(e, axis=-1, keepdims=True))).astype(out_ref.dtype)


# --------------------------------------------------------------------------- wrappers

@functools.lru_cache(maxsize=None)
def _make_clip_call(n_pad, tn, d_pad, k_pad, k_valid):
    kernel = functools.partial(_clip_kernel, k_valid=k_valid)
    resident = d_pad * k_pad * 2                                   # bf16 W
    per_buffer = tn * d_pad * 2 + tn * k_pad * 2 + tn * _LANE * 4  # X + prob + ent
    scratch = 4 * tn * k_pad * 4                                   # f32 intermediates
    vmem_limit = _vmem_limit_bytes(resident, per_buffer, scratch)
    cost = pl.CostEstimate(
        flops=2 * n_pad * d_pad * k_pad + 6 * n_pad * k_pad,
        transcendentals=n_pad * k_pad + n_pad,
        bytes_accessed=(n_pad * d_pad * 2 + d_pad * k_pad * 2
                        + n_pad * k_pad * 2 + n_pad * _LANE * 4))
    call = pl.pallas_call(
        kernel,
        grid=(n_pad // tn,),
        in_specs=[pl.BlockSpec((tn, d_pad), lambda i: (i, 0)),   # X row tile
                  _resident_spec((d_pad, k_pad))],               # W resident
        out_specs=(pl.BlockSpec((tn, k_pad), lambda i: (i, 0)),
                   pl.BlockSpec((tn, _LANE), lambda i: (i, 0))),
        out_shape=(jax.ShapeDtypeStruct((n_pad, k_pad), jnp.bfloat16),
                   jax.ShapeDtypeStruct((n_pad, _LANE), jnp.float32)),
        compiler_params=pltpu.CompilerParams(
            dimension_semantics=("parallel",),
            vmem_limit_bytes=vmem_limit),
        cost_estimate=cost,
    )
    return jax.jit(call)


@functools.lru_cache(maxsize=None)
def _make_final_call(n_pad, tn, d_pad, k_pad, mp_pad, mn_pad, k_valid):
    kernel = functools.partial(_final_kernel, k_valid=k_valid)
    resident = 2 * (d_pad * k_pad + d_pad * (mp_pad + mn_pad)
                    + (mp_pad + mn_pad) * k_pad)                 # bf16 W + caches
    per_buffer = tn * d_pad * 2 + tn * k_pad * 4                 # X + out
    scratch = 3 * tn * k_pad * 4 + tn * (mp_pad + mn_pad) * (4 + 2)
    vmem_limit = _vmem_limit_bytes(resident, per_buffer, scratch)
    flops = (2 * n_pad * d_pad * (k_pad + mp_pad + mn_pad)
             + 2 * n_pad * (mp_pad + mn_pad) * k_pad + 8 * n_pad * k_pad)
    cost = pl.CostEstimate(
        flops=flops,
        transcendentals=n_pad * (mp_pad + mn_pad + k_pad),
        bytes_accessed=n_pad * d_pad * 2 + resident + n_pad * k_pad * 4)
    call = pl.pallas_call(
        kernel,
        grid=(n_pad // tn,),
        in_specs=[pl.BlockSpec((tn, d_pad), lambda i: (i, 0)),   # X row tile
                  _resident_spec((d_pad, k_pad)),                # W
                  _resident_spec((d_pad, mp_pad)),               # pos keys (pre-scaled)
                  _resident_spec((mp_pad, k_pad)),               # pos values (pre-scaled)
                  _resident_spec((d_pad, mn_pad)),               # neg keys (pre-scaled)
                  _resident_spec((mn_pad, k_pad))],              # neg values (pre-scaled)
        out_specs=pl.BlockSpec((tn, k_pad), lambda i: (i, 0)),
        out_shape=jax.ShapeDtypeStruct((n_pad, k_pad), jnp.float32),
        compiler_params=pltpu.CompilerParams(
            dimension_semantics=("parallel",),
            vmem_limit_bytes=vmem_limit),
        cost_estimate=cost,
    )
    return jax.jit(call)


# --------------------------------------------------------------------------- TDA solver

class TDASolverPallas:
    """JAX/Pallas port of TDA_solver.forward.

    MXU operands (features, prototypes, cache keys/values) are bf16 (matching
    the reference's .half() cache values); accumulation and softmax are f32.
    """

    def __init__(self, K, d, pos_capacity=3, neg_capacity=2, pos_beta=5.0, neg_beta=1.0,
                 pos_alpha=2.0, neg_alpha=0.117, upper_entropy_bound=0.5,
                 lower_entropy_bound=0.2, lower_probability_bound=0.03):
        self.K = int(K)
        self.d = int(d)
        self.pos = dict(shot_capacity=int(pos_capacity), alpha=float(pos_alpha),
                        beta=float(pos_beta))
        self.neg = dict(shot_capacity=int(neg_capacity), alpha=float(neg_alpha),
                        beta=float(neg_beta), ent_lo=float(lower_entropy_bound),
                        ent_hi=float(upper_entropy_bound),
                        mask_lo=float(lower_probability_bound), mask_hi=1.0)
        self.pos_cache = {}
        self.neg_cache = {}
        # padded device-side dims (fixed per config -> single compilation)
        self.d_pad = _round_up(self.d, _LANE)
        self.k_pad = _round_up(self.K, _LANE)
        self.mp_pad = _round_up(max(self.K * self.pos['shot_capacity'], 1), _LANE)
        self.mn_pad = _round_up(max(self.K * self.neg['shot_capacity'], 1), _LANE)

    # ---- host-side cache bookkeeping (mirrors update_cache) -------------------
    @staticmethod
    def _update_cache(cache, pred, item, capacity):
        if pred in cache:
            if len(cache[pred]) < capacity:
                cache[pred].append(item)
            elif item[1] < cache[pred][-1][1]:
                cache[pred][-1] = item
            cache[pred] = sorted(cache[pred], key=lambda t: t[1])
        else:
            cache[pred] = [item]

    def _build_cache_arrays(self, cache, is_neg):
        """Padded (d_pad, M_pad) keys and (M_pad, K_pad) values, with
        alpha / beta / exp(-beta) / sign folded in on the host (one-time numpy
        pre-scale when the cache is frozen). Empty cache -> zero value rows ->
        the cache term is exactly 0, matching the reference skipping it."""
        m_max = self.mn_pad if is_neg else self.mp_pad
        keys = np.zeros((self.d_pad, m_max), np.float32)
        vals = np.zeros((m_max, self.k_pad), np.float32)
        if is_neg:
            key_scale = self.neg['beta']
            val_scale = -self.neg['alpha'] * math.exp(-self.neg['beta'])
        else:
            key_scale = self.pos['beta']
            val_scale = self.pos['alpha'] * math.exp(-self.pos['beta'])
        m = 0
        for ci in sorted(cache.keys()):
            for item in cache[ci]:
                keys[:self.d, m] = key_scale * item[0]
                if is_neg:
                    pm = item[2]
                    mask = ((pm > self.neg['mask_lo']) &
                            (pm < self.neg['mask_hi'])).astype(np.float32)
                    vals[m, :self.K] = val_scale * mask
                else:
                    vals[m, ci] = val_scale
                m += 1
        return (jnp.asarray(keys, dtype=jnp.bfloat16),
                jnp.asarray(vals, dtype=jnp.bfloat16))

    # ---- forward ---------------------------------------------------------------
    def forward(self, query_features, query_labels, clip_prototypes):
        del query_labels  # only used for accuracy bookkeeping, not in returned tensors
        K, d = self.K, self.d

        x_np = np.asarray(query_features, dtype=np.float32).reshape(-1, d)
        n = x_np.shape[0]
        w_np = np.asarray(clip_prototypes, dtype=np.float32).squeeze().reshape(d, K)

        # pad rows/lanes once, upload once (bf16 MXU operands)
        n_pad, tn = _row_tiling(n)
        x_pad = np.zeros((n_pad, self.d_pad), np.float32)
        x_pad[:n, :d] = x_np
        w_pad = np.zeros((self.d_pad, self.k_pad), np.float32)
        w_pad[:d, :K] = w_np
        x_dev = jnp.asarray(x_pad, dtype=jnp.bfloat16)
        w_dev = jnp.asarray(w_pad, dtype=jnp.bfloat16)

        # ---- one batched Pallas call: softmax(100*X@W) + per-row entropy ------
        clip_call = _make_clip_call(n_pad, tn, self.d_pad, self.k_pad, K)
        prob_pad, ent_pad = clip_call(x_dev, w_dev)
        text_softmax = prob_pad[:n, :K].astype(jnp.float32)   # upcast bf16 store

        # ---- pass 1 (run_test_tda): host-only cache building -------------------
        # pred/loss/prob depend only on the CLIP outputs, never on the cache.
        prob_np = np.asarray(text_softmax)
        ent_np = np.asarray(ent_pad[:n, 0])
        preds = np.argmax(prob_np, axis=1)
        log2k = math.log2(K)
        for i in range(n):
            loss = float(ent_np[i])
            pred = int(preds[i])
            self._update_cache(self.pos_cache, pred, [x_np[i], loss],
                               self.pos['shot_capacity'])
            prop_entropy = loss / log2k
            if self.neg['ent_lo'] < prop_entropy < self.neg['ent_hi']:
                self._update_cache(self.neg_cache, pred, [x_np[i], loss, prob_np[i]],
                                   self.neg['shot_capacity'])

        # ---- pass 2: frozen caches, one batched fused kernel + softmax ---------
        pk, pv = self._build_cache_arrays(self.pos_cache, is_neg=False)
        nk, nv = self._build_cache_arrays(self.neg_cache, is_neg=True)
        final_call = _make_final_call(n_pad, tn, self.d_pad, self.k_pad,
                                      self.mp_pad, self.mn_pad, K)
        final_prob_pad = final_call(x_dev, w_dev, pk, pv, nk, nv)
        final_softmax = final_prob_pad[:n, :K]

        return text_softmax, final_softmax


# TODO(synk): the avg_entropy / batch-entropy-selection branch of get_clip_logits is
# only reachable for multi-image augmentation batches inside compute_tda_logits, which
# this forward never issues (all calls are single-sample), so it is not implemented.

# --------------------------------------------------------------------------- main

if __name__ == "__main__":
    K, d, N = 16, 32, 8
    key = jax.random.PRNGKey(0)
    k1, k2, k3 = jax.random.split(key, 3)

    query_features = jax.random.normal(k1, (N, d), jnp.float32)
    query_features = query_features / jnp.linalg.norm(query_features, axis=-1, keepdims=True)

    clip_prototypes = jax.random.normal(k2, (d, K, 1), jnp.float32)
    clip_prototypes = clip_prototypes / jnp.linalg.norm(clip_prototypes, axis=0, keepdims=True)

    query_labels = jax.random.randint(k3, (N,), 0, K)

    solver = TDASolverPallas(K, d)
    text_sm, final_sm = solver.forward(query_features, query_labels, clip_prototypes)
    jax.block_until_ready((text_sm, final_sm))

    assert text_sm.shape == (N, K) and final_sm.shape == (N, K)
    assert bool(jnp.all(jnp.isfinite(text_sm))) and bool(jnp.all(jnp.isfinite(final_sm)))
    assert bool(jnp.all(jnp.abs(jnp.sum(text_sm, axis=-1) - 1.0) < 0.05))
    assert bool(jnp.all(jnp.abs(jnp.sum(final_sm, axis=-1) - 1.0) < 0.05))
    print("KERNEL_OK")
</pallas_src>

<mosaic_0001>
module attributes {stable_mosaic.version = 11 : i64} {
  func.func @_clip_kernel(%arg0: i32, %arg1: memref<8x128xbf16, #tpu.memory_space<vmem>>, %arg2: memref<128x128xbf16, #tpu.memory_space<vmem>>, %arg3: memref<8x128xbf16, #tpu.memory_space<vmem>>, %arg4: memref<8x128xf32, #tpu.memory_space<vmem>>) attributes {dimension_semantics = [#tpu.dimension_semantics<parallel>], iteration_bounds = array<i64: 1>, scalar_prefetch = 0 : i64, scratch_operands = 0 : i64, tpu.core_type = #tpu.core_type<tc>, window_params = [{transform_indices = @transform_0, window_bounds = array<i64: 8, 128>}, {pipeline_mode = #tpu.pipeline_mode<synchronous>, transform_indices = @transform_1, window_bounds = array<i64: 128, 128>}, {transform_indices = @transform_2, window_bounds = array<i64: 8, 128>}, {transform_indices = @transform_3, window_bounds = array<i64: 8, 128>}]} {
    %c0 = arith.constant 0 : index
    %c0_0 = arith.constant 0 : index
    %0 = vector.load %arg1[%c0, %c0_0] : memref<8x128xbf16, #tpu.memory_space<vmem>>, vector<8x128xbf16>
    %c0_1 = arith.constant 0 : index
    %c0_2 = arith.constant 0 : index
    %1 = vector.load %arg2[%c0_1, %c0_2] : memref<128x128xbf16, #tpu.memory_space<vmem>>, vector<128x128xbf16>
    %cst = arith.constant dense<0.000000e+00> : vector<8x128xf32>
    %2 = tpu.matmul %0, %1, %cst {dimension_numbers = #tpu.dot_dimension_numbers<[1], [0], [0], [1], [0, 0, 1, 1], [], []>} : vector<8x128xbf16>, vector<128x128xbf16>, vector<8x128xf32> -> vector<8x128xf32>
    %cst_3 = arith.constant 1.000000e+02 : f32
    %3 = vector.broadcast %cst_3 : f32 to vector<8x128xf32>
    %4 = arith.mulf %3, %2 : vector<8x128xf32>
    %5 = tpu.iota {dimensions = array<i32: 1>} : vector<8x128xi32>
    %c16_i32 = arith.constant 16 : i32
    %6 = vector.broadcast %c16_i32 : i32 to vector<8x128xi32>
    %7 = arith.cmpi slt, %5, %6 : vector<8x128xi32>
    %cst_4 = arith.constant -1.000000e+30 : f32
    %8 = vector.broadcast %cst_4 : f32 to vector<8x128xf32>
    %9 = arith.select %7, %4, %8 : vector<8x128xi1>, vector<8x128xf32>
    %cst_5 = arith.constant dense<0xFF800000> : vector<8xf32>
    %10 = vector.multi_reduction <maximumf>, %9, %cst_5 [1] : vector<8x128xf32> to vector<8xf32>
    %11 = vector.shape_cast %10 : vector<8xf32> to vector<8x1xf32>
    %12 = vector.broadcast %11 : vector<8x1xf32> to vector<8x128xf32>
    %13 = arith.subf %9, %12 : vector<8x128xf32>
    %14 = math.exp %13 : vector<8x128xf32>
    %cst_6 = arith.constant dense<0.000000e+00> : vector<8xf32>
    %15 = vector.multi_reduction <add>, %14, %cst_6 [1] : vector<8x128xf32> to vector<8xf32>
    %16 = vector.shape_cast %15 : vector<8xf32> to vector<8x1xf32>
    %cst_7 = arith.constant 1.000000e+00 : f32
    %17 = vector.broadcast %cst_7 : f32 to vector<8x1xf32>
    %18 = arith.divf %17, %16 : vector<8x1xf32>
    %19 = vector.broadcast %18 : vector<8x1xf32> to vector<8x128xf32>
    %20 = arith.mulf %14, %19 : vector<8x128xf32>
    %21 = arith.truncf %20 : vector<8x128xf32> to vector<8x128xbf16>
    %c0_8 = arith.constant 0 : index
    %c0_9 = arith.constant 0 : index
    %22 = vector.load %arg3[%c0_8, %c0_9] : memref<8x128xbf16, #tpu.memory_space<vmem>>, vector<8x128xbf16>
    tpu.vector_store %arg3[%c0_8, %c0_9], %21 {strides = array<i32>} : memref<8x128xbf16, #tpu.memory_space<vmem>>, vector<8x128xbf16>,
    %23 = vector.broadcast %11 : vector<8x1xf32> to vector<8x128xf32>
    %24 = arith.subf %9, %23 : vector<8x128xf32>
    %25 = math.log %16 : vector<8x1xf32>
    %26 = vector.broadcast %25 : vector<8x1xf32> to vector<8x128xf32>
    %27 = arith.subf %24, %26 : vector<8x128xf32>
    %28 = arith.mulf %20, %27 : vector<8x128xf32>
    %cst_10 = arith.constant 0.000000e+00 : f32
    %29 = vector.broadcast %cst_10 : f32 to vector<8x128xf32>
    %30 = arith.select %7, %28, %29 : vector<8x128xi1>, vector<8x128xf32>
    %cst_11 = arith.constant dense<0.000000e+00> : vector<8xf32>
    %31 = vector.multi_reduction <add>, %30, %cst_11 [1] : vector<8x128xf32> to vector<8xf32>
    %32 = vector.shape_cast %31 : vector<8xf32> to vector<8x1xf32>
    %cst_12 = arith.constant 0.000000e+00 : f32
    %33 = vector.broadcast %cst_12 : f32 to vector<8x1xf32>
    %34 = arith.subf %33, %32 : vector<8x1xf32>
    %35 = vector.shape_cast %34 : vector<8x1xf32> to vector<8x1xf32>
    %36 = vector.broadcast %35 : vector<8x1xf32> to vector<8x128xf32>
    %c0_13 = arith.constant 0 : index
    %c0_14 = arith.constant 0 : index
    %37 = vector.load %arg4[%c0_13, %c0_14] : memref<8x128xf32, #tpu.memory_space<vmem>>, vector<8x128xf32>
    tpu.vector_store %arg4[%c0_13, %c0_14], %36 {strides = array<i32>} : memref<8x128xf32, #tpu.memory_space<vmem>>, vector<8x128xf32>,
    return
  }
  func.func @transform_0(%arg0: i32) -> (i32, i32) {
    %c0_i32 = arith.constant 0 : i32
    %c0_i32_0 = arith.constant 0 : i32
    return %arg0, %c0_i32 : i32, i32
  }
  func.func @transform_1(%arg0: i32) -> (i32, i32) {
    %c0_i32 = arith.constant 0 : i32
    %c0_i32_0 = arith.constant 0 : i32
    %c0_i32_1 = arith.constant 0 : i32
    return %c0_i32, %c0_i32_0 : i32, i32
  }
  func.func @transform_2(%arg0: i32) -> (i32, i32) {
    %c0_i32 = arith.constant 0 : i32
    %c0_i32_0 = arith.constant 0 : i32
    return %arg0, %c0_i32 : i32, i32
  }
  func.func @transform_3(%arg0: i32) -> (i32, i32) {
    %c0_i32 = arith.constant 0 : i32
    %c0_i32_0 = arith.constant 0 : i32
    return %arg0, %c0_i32 : i32, i32
  }
}

</mosaic_0001>

<bundles_post_ra>
// kernel: tpu_custom_call.1
= control target key start
LH: loop header
LB: loop body
LE: loop exit
PB: predicated region body
PF: predicated region fallthrough
CT: control target
= control target key end

     0   :  { %9 = vsyncpa [#allocation3], 0  ;;  %s443_s0 = inlined_call_operand.hbm [shape: bf16[8,128], index: 0, kind: input, shape index: {}]   ;;  %s444_s1 = inlined_call_operand.hbm [shape: bf16[128,128], index: 1, kind: input, shape index: {}]   ;;  %s445_s2 = inlined_call_operand.hbm [shape: bf16[8,128], index: 2, kind: output, shape index: {0}]   ;;  %s446_s3 = inlined_call_operand.hbm [shape: f32[8,128], index: 3, kind: output, shape index: {1}]  }
   0x1   :  { %10 = vsyncpa [#allocation6], 0 }
   0x2   :  { %11 = vsyncpa [#allocation4], 0 }
   0x3   :  { %12 = vsyncpa [#allocation9], 0  ;;  %s358_s12 = smov [#allocation2]   ;;  %s359_s14 = smov [#allocation5]  }
   0x4   :  { %s19_s13 = sshll.u32 %s358_s12, 4  ;;  %s28_s15 = sshll.u32 %s359_s14, 4  ;;  %s20_s13 = int_to_ptr.vmem [resolvable:$true] %s19_s13  ;;  %s386_s15 = int_to_ptr.vmem [resolvable:$true] %s28_s15 }
   0x5   :  { %s262_s18 = scalar_lea.hbm %s443_s0, 64 }
   0x6   :  { %p263_p0 = scmp.ne.s32.totalorder %s443_s0, %s262_s18  ;;  %p266_p1 = scmp.lt.u32.totalorder %s262_s18, %s443_s0 }
   0x8   :  { %p268_p2 = pnand %p266_p1, %p263_p0 }
   0xa   :  { %271 = shalt.err (!%p268_p2)
}
   0xb   :  { %s272_s23 = scalar_lea.vmem %s20_s13, 64  ;;  %p277_p4 = scmp.lt.s32.totalorder %s20_s13, %s20_s13 }
   0xc   :  { %p273_p3 = scmp.ne.s32.totalorder %s20_s13, %s272_s23  ;;  %p278_p5 = scmp.lt.s32.totalorder %s272_s23, %s272_s23 }
   0xe   :  { %p279_p6 = por %p278_p5, %p277_p4 }
  0x10   :  { %p280_p7 = pnand %p279_p6, %p273_p3 }
  0x12   :  { %283 = shalt.err (!%p280_p7)
}
  0x13   :  { %22 = dma.hbm_to_vmem [thread:$0]  %s443_s0, 64, %s20_s13, [#allocation3]  }
  0x14   :  { %s284_s28 = scalar_lea.hbm %s444_s1, 1024 }
  0x15   :  { %p285_p8 = scmp.ne.s32.totalorder %s444_s1, %s284_s28  ;;  %p288_p9 = scmp.lt.u32.totalorder %s284_s28, %s444_s1 }
  0x17   :  { %p290_p10 = pnand %p288_p9, %p285_p8 }
  0x19   :  { %293 = shalt.err (!%p290_p10)
}
  0x1a   :  { %s294_s6 = scalar_lea.vmem %s386_s15, 1024  ;;  %p299_p12 = scmp.lt.s32.totalorder %s386_s15, %s386_s15 }
  0x1b   :  { %p295_p11 = scmp.ne.s32.totalorder %s386_s15, %s294_s6  ;;  %p300_p13 = scmp.lt.s32.totalorder %s294_s6, %s294_s6 }
  0x1d   :  { %p301_p0 = por %p300_p13, %p299_p12 }
  0x1f   :  { %p302_p1 = pnand %p301_p0, %p295_p11 }
  0x21   :  { %305 = shalt.err (!%p302_p1)
}
  0x22   :  { %s360_s0 = smov 64   ;;  %s361_s7 = smov 4  }
  0x23   :  { %34 = dma.hbm_to_vmem [thread:$0]  %s444_s1, 1024, %s386_s15, [#allocation6], %s360_s0, %s360_s0, %s361_s7  }
  0x24   :  { %350 = dma.done.wait [#allocation3], 64  }
  0x25   :  { %351 = vsyncadd [#allocation3], 4294967232 }
  0x26   :  { %352 = dma.done.wait [#allocation6], 1024  }
  0x27   :  { %353 = vsyncadd [#allocation6], 4294966272  ;;  %v362_v0 = vmov 0.0   ;;  %vm363_vm0 = vmmov 0   ;;  %v248_v1 = vld [vmem:[#allocation5] sm:$0xff]   ;;  %v249_v2 = vld [vmem:[#allocation5 + $0x8] sm:$0xff]   ;;  %v148_v10 = vlaneseq }
  0x28   :  { %220 = vmatprep.subr.bf16.mxu0 %v362_v0  ;;  %236 = vmatprep.mubr.msk.bf16.mxu0 %vm363_vm0, %v362_v0  ;;  %v250_v3 = vld [vmem:[#allocation5 + $0x10] sm:$0xff]   ;;  %v251_v4 = vld [vmem:[#allocation5 + $0x18] sm:$0xff]   ;;  %v252_v5 = vld [vmem:[#allocation5 + $0x20] sm:$0xff]   ;;  %s364_s1 = smov [#allocation7]  }
  0x29   :  { %221 = vmatpush3.bf16.msra.mxu0 %v248_v1  ;;  %v253_v6 = vld [vmem:[#allocation5 + $0x28] sm:$0xff]   ;;  %v254_v7 = vld [vmem:[#allocation5 + $0x30] sm:$0xff]   ;;  %v255_v8 = vld [vmem:[#allocation5 + $0x38] sm:$0xff]   ;;  %v149_v11 = vand.u32 127, %v148_v10  ;;  %s179_s10 = sshll.u32 %s364_s1, 4  ;;  %s180_s10 = int_to_ptr.vmem [resolvable:$true] %s179_s10 }
  0x2a   :  { %222 = vmatprep.subr.bf16.mxu0 %v362_v0  ;;  %v42_v9 = vld [vmem:[#allocation2] sm:$0xf]  ;;  %s306_s11 = scalar_lea.vmem %s180_s10, 64  ;;  %p311_p3 = scmp.lt.s32.totalorder %s180_s10, %s180_s10 }
  0x2b   :  { %vm150_vm1 = vcmp.lt.s32.totalorder %v149_v11, 16  ;;  %p307_p2 = scmp.ne.s32.totalorder %s180_s10, %s306_s11  ;;  %p312_p4 = scmp.lt.s32.totalorder %s306_s11, %s306_s11 }
  0x2d   :  { %223 = vmatpush3.bf16.msra.mxu0 %v249_v2  ;;  %p313_p5 = por %p312_p4, %p311_p3 }
  0x2e   :  { %224 = vmatprep.subr.bf16.mxu0 %v362_v0 }
  0x2f   :  { %p314_p6 = pnand %p313_p5, %p307_p2 }
  0x31   :  { %225 = vmatpush3.bf16.msra.mxu0 %v250_v3 }
  0x32   :  { %226 = vmatprep.subr.bf16.mxu0 %v362_v0 }
  0x35   :  { %227 = vmatpush3.bf16.msra.mxu0 %v251_v4 }
  0x36   :  { %228 = vmatprep.subr.bf16.mxu0 %v362_v0 }
  0x39   :  { %229 = vmatpush3.bf16.msra.mxu0 %v252_v5 }
  0x3a   :  { %230 = vmatprep.subr.bf16.mxu0 %v362_v0 }
  0x3d   :  { %231 = vmatpush3.bf16.msra.mxu0 %v253_v6 }
  0x3e   :  { %232 = vmatprep.subr.bf16.mxu0 %v362_v0 }
  0x41   :  { %233 = vmatpush3.bf16.msra.mxu0 %v254_v7 }
  0x42   :  { %234 = vmatprep.subr.bf16.mxu0 %v362_v0 }
  0x45   :  { %235 = vmatpush3.bf16.msra.mxu0 %v255_v8 }
  0x48   :  { %237 = vmatmul.mubr.bf16.vlgmr.msra.gmra.mrb[0].mxu0 %v42_v9 }
 0x11b   :  { %v141_v12 = vpop.f32.mrb[0].mxu0 }
 0x11c   :  { %v147_v13 = vmul.f32 100.0, %v141_v12  ;;  %v238_v14 = vpop.f32.mrb[1].mxu0 }
 0x11d   :  { %v144_v15 = vpop.f32.mrb[2].mxu0 }
 0x11e   :  { %v239_v16 = vpop.f32.mrb[3].mxu0  ;;  %v151_v17 = vsel %vm150_vm1, %v147_v13, -1e+30 }
 0x11f   :  { %152 = vmax.xlane.f32.xlu0 %v151_v17 }
 0x1ac   :  { %v153_v18 = vpop.xlane.xlu0 %152 }
 0x1ad   :  { %v154_v19 = vsub.f32 %v151_v17, %v153_v18 }
 0x1af   :  { %v155_v20 = vmul.f32 1.442695, %v154_v19 }
 0x1b1   :  { %256 = vpow2.f32 %v155_v20 }
 0x1bb   :  { %v257_v21 = vpop.eup %256 }
 0x1bc   :  { %157 = vadd.xlane.f32.xlu0 %v257_v21 }
 0x249   :  { %v158_v22 = vpop.xlane.xlu0 %157 }
 0x24a   :  { %258 = vrcp.f32 %v158_v22 }
 0x24b   :  { %260 = vlog2.f32 %v158_v22 }
 0x254   :  { %v259_v23 = vpop.eup %258 }
 0x255   :  { %v261_v24 = vpop.eup %260  ;;  %v161_v25 = vmul.f32 %v259_v23, %v257_v21 }
 0x256   :  { %v165_v26 = vmul.f32 0.6931472, %v261_v24 }
 0x257   :  { %v162_v27 = vpack.c.bf16 %v161_v25, %v161_v25 }
 0x258   :  { %v166_v28 = vsub.f32 %v154_v19, %v165_v26 }
 0x259   :  { %163 = vst [vmem:[#allocation7] sm:$0xf] %v162_v27 }
 0x25a   :  { %v167_v29 = vmul.f32 %v166_v28, %v161_v25 }
 0x25c   :  { %v168_v30 = vsel %vm150_vm1, %v167_v29, 0.0 }
 0x25d   :  { %169 = vadd.xlane.f32.xlu1 %v168_v30 }
 0x25e   :  { %317 = shalt.err (!%p314_p6)
}
 0x25f   :  { %s318_s14 = scalar_lea.hbm %s445_s2, 64 }
 0x260   :  { %p319_p7 = scmp.ne.s32.totalorder %s445_s2, %s318_s14  ;;  %p322_p8 = scmp.lt.u32.totalorder %s318_s14, %s445_s2 }
 0x262   :  { %p324_p9 = pnand %p322_p8, %p319_p7 }
 0x264   :  { %327 = shalt.err (!%p324_p9)
}
 0x265   :  { %182 = dma.vmem_to_hbm [thread:$0]  %s180_s10, 64, %s445_s2, [#allocation4]  }
 0x266   :  { %s365_s21 = smov [#allocation8]  }
 0x267   :  { %s189_s22 = sshll.u32 %s365_s21, 4  ;;  %s190_s22 = int_to_ptr.vmem [resolvable:$true] %s189_s22 }
 0x268   :  { %s328_s23 = scalar_lea.vmem %s190_s22, 128  ;;  %p333_p11 = scmp.lt.s32.totalorder %s190_s22, %s190_s22 }
 0x269   :  { %p329_p10 = scmp.ne.s32.totalorder %s190_s22, %s328_s23  ;;  %p334_p12 = scmp.lt.s32.totalorder %s328_s23, %s328_s23 }
 0x26b   :  { %p335_p13 = por %p334_p12, %p333_p11 }
 0x26d   :  { %p336_p0 = pnand %p335_p13, %p329_p10 }
 0x2ea   :  { %v170_v31 = vpop.xlane.xlu1 %169 }
 0x2eb   :  { %v171_v32 = vsub.f32 0.0, %v170_v31 }
 0x2ed   :  { %172 = vst [vmem:[#allocation8] sm:$0xff] %v171_v32 }
 0x2ee   :  { %339 = shalt.err (!%p336_p0)
}
 0x2ef   :  { %s340_s26 = scalar_lea.hbm %s446_s3, 128 }
 0x2f0   :  { %p341_p1 = scmp.ne.s32.totalorder %s446_s3, %s340_s26  ;;  %p344_p2 = scmp.lt.u32.totalorder %s340_s26, %s446_s3 }
 0x2f2   :  { %p346_p3 = pnand %p344_p2, %p341_p1 }
 0x2f4   :  { %349 = shalt.err (!%p346_p3)
}
 0x2f5   :  { %192 = dma.vmem_to_hbm [thread:$0]  %s190_s22, 128, %s446_s3, [#allocation9]  }
 0x2f6   :  { %354 = dma.done.wait [#allocation4], 64  }
 0x2f7   :  { %355 = vsyncadd [#allocation4], 4294967232 }
 0x2f8   :  { %356 = dma.done.wait [#allocation9], 128  }
 0x2f9   :  { %357 = vsyncadd [#allocation9], 4294967168 }
 0x2fa   :  { %199 = vsyncpa [#allocation3], 1 }
 0x2fb   :  { %200 = vsyncpa [#allocation6], 1 }
 0x2fc   :  { %201 = vsyncpa [#allocation4], 1 }
 0x2fd   :  { %202 = vsyncpa [#allocation9], 1 }

</bundles_post_ra>
